<compile_context>
chip_gen: v7x
topology: tpu7x:2x2x1
jax: 0.10.0
libtpu: 0.0.40
codegen_flags: <defaults>
</compile_context>

<pallas_src>
import math

import jax
import jax.numpy as jnp
from jax.experimental import pallas as pl
from jax.experimental.pallas import tpu as pltpu


# ----------------------------------------------------------------------------
# pe buffer (mirrors the PyTorch register_buffer; unused by forward).
# ----------------------------------------------------------------------------
def _build_pe(max_len: int, d_model: int) -> jnp.ndarray:
    """Sinusoidal positional-encoding buffer, shape (1, max_len, d_model).

    Lane-friendly construction (no strided interleaved writes) and robust to
    odd d_model (the PyTorch original shape-mismatches there).
    """
    half = (d_model + 1) // 2
    position = jnp.arange(max_len, dtype=jnp.float32)[:, None]            # (L, 1)
    div_term = jnp.exp(
        jnp.arange(0, d_model, 2, dtype=jnp.float32) * -(math.log(10000.0) / d_model)
    )                                                                      # (half,)
    ang = position * div_term                                              # (L, half)
    pe = jnp.stack([jnp.sin(ang), jnp.cos(ang)], axis=-1).reshape(max_len, 2 * half)
    pe = pe[:, :d_model]                                                   # handles odd d_model
    return pe[None, :, :]                                                  # (1, L, d_model)


# ----------------------------------------------------------------------------
# Pallas kernel (identity copy of the current tile).
# ----------------------------------------------------------------------------
def _identity_copy_kernel(x_ref, o_ref):
    # forward(x) == x : pure element copy of the VMEM tile.
    o_ref[...] = x_ref[...]


_LANE = 128
# ~2 MiB blocks: double-buffered input + output => ~8 MiB VMEM, safe on
# v5e (16 MiB scoped default), v6e (32 MiB) and v7x (64 MiB physical).
_TARGET_BLOCK_BYTES = 2 * 1024 * 1024
_VMEM_LIMIT_BYTES = 32 * 1024 * 1024


def _lane_dense_view(total_elems: int):
    """Pick (rows, cols) with cols a large multiple of 128 dividing the size."""
    for c in (64 * _LANE, 32 * _LANE, 16 * _LANE, 8 * _LANE, 4 * _LANE, 2 * _LANE, _LANE):
        if total_elems % c == 0:
            return total_elems // c, c
    return None


def _identity_2d(x2: jnp.ndarray) -> jnp.ndarray:
    """Identity on a lane-dense (rows, cols) view, tiled in ~2 MiB row blocks."""
    rows, cols = x2.shape
    itemsize = x2.dtype.itemsize
    block_rows = max(8, (_TARGET_BLOCK_BYTES // (cols * itemsize)) // 8 * 8)
    block_rows = min(block_rows, rows)   # either a multiple of 8 or the full dim
    grid = (pl.cdiv(rows, block_rows),)
    return pl.pallas_call(
        _identity_copy_kernel,
        out_shape=jax.ShapeDtypeStruct((rows, cols), x2.dtype),
        grid_spec=pltpu.PrefetchScalarGridSpec(
            num_scalar_prefetch=0,
            grid=grid,
            in_specs=[pl.BlockSpec((block_rows, cols), lambda i: (i, 0))],
            out_specs=pl.BlockSpec((block_rows, cols), lambda i: (i, 0)),
        ),
        # Alias output onto input: under jit-with-donation this becomes an
        # in-place no-op buffer-wise instead of a fresh HBM allocation.
        input_output_aliases={0: 0},
        compiler_params=pltpu.CompilerParams(
            dimension_semantics=("parallel",),   # shards row tiles across v7x's 2 TCs
            vmem_limit_bytes=_VMEM_LIMIT_BYTES,
        ),
    )(x2)


def _identity_full(x: jnp.ndarray) -> jnp.ndarray:
    """Fallback: whole array as a single VMEM block (sizes not factorable by 128)."""
    return pl.pallas_call(
        _identity_copy_kernel,
        out_shape=jax.ShapeDtypeStruct(x.shape, x.dtype),
        in_specs=[pl.BlockSpec(memory_space=pltpu.MemorySpace.VMEM)],
        out_specs=pl.BlockSpec(memory_space=pltpu.MemorySpace.VMEM),
        input_output_aliases={0: 0},
        compiler_params=pltpu.CompilerParams(vmem_limit_bytes=_VMEM_LIMIT_BYTES),
    )(x)


def positional_encoding_forward(x: jnp.ndarray) -> jnp.ndarray:
    """PositionalEncoding.forward (identity on x) as a Pallas TPU kernel.

    NOTE: the optimal production implementation is simply `return x`; the
    kernel exists as the Pallas deliverable and as the scaffold for a future
    fused (x + pe) + dropout kernel.
    """
    view = _lane_dense_view(x.size)
    if view is None:
        # TODO(synk): pad-to-128 path for sizes with no multiple-of-128 factor.
        return _identity_full(x)
    rows, cols = view
    y2 = _identity_2d(x.reshape(rows, cols))   # reshape of contiguous array is free
    return y2.reshape(x.shape)


class PositionalEncodingPallas:
    def __init__(self, d_model: int, dropout: float, max_len: int = 5000):
        self.d_model = d_model
        self.dropout_p = dropout               # never applied in forward (matches PyTorch module)
        self.pe = _build_pe(max_len, d_model)  # registered buffer; unused in forward

    def __call__(self, x: jnp.ndarray) -> jnp.ndarray:
        return positional_encoding_forward(x)


if __name__ == "__main__":
    B, S, D = 2, 8, 32
    key = jax.random.PRNGKey(0)
    x = jax.random.normal(key, (B, S, D), dtype=jnp.float32)

    module = PositionalEncodingPallas(d_model=D, dropout=0.1, max_len=64)
    out = jax.block_until_ready(module(x))

    # Forward semantics: output must equal input exactly.
    assert out.shape == x.shape and out.dtype == x.dtype
    assert bool(jnp.all(out == x))
    # pe buffer sanity (shape mirrors the PyTorch register_buffer).
    assert module.pe.shape == (1, 64, D)
    # pe content sanity: column 0 is sin(position), column 1 is cos(position).
    assert bool(jnp.allclose(module.pe[0, :, 0], jnp.sin(jnp.arange(64.0)), atol=1e-5))
    assert bool(jnp.allclose(module.pe[0, :, 1], jnp.cos(jnp.arange(64.0)), atol=1e-5))

    print("KERNEL_OK")
</pallas_src>

<mosaic_0001>
module attributes {stable_mosaic.version = 11 : i64} {
  func.func @_identity_copy_kernel(%arg0: i32, %arg1: memref<1x512xf32, #tpu.memory_space<vmem>>, %arg2: memref<1x512xf32, #tpu.memory_space<vmem>>) attributes {dimension_semantics = [#tpu.dimension_semantics<parallel>], iteration_bounds = array<i64: 1>, scalar_prefetch = 0 : i64, scratch_operands = 0 : i64, tpu.core_type = #tpu.core_type<tc>, window_params = [{transform_indices = @transform_0, window_bounds = array<i64: 1, 512>}, {transform_indices = @transform_1, window_bounds = array<i64: 1, 512>}]} {
    %c0 = arith.constant 0 : index
    %c0_0 = arith.constant 0 : index
    %0 = vector.load %arg1[%c0, %c0_0] : memref<1x512xf32, #tpu.memory_space<vmem>>, vector<1x512xf32>
    %c0_1 = arith.constant 0 : index
    %c0_2 = arith.constant 0 : index
    %1 = vector.load %arg2[%c0_1, %c0_2] : memref<1x512xf32, #tpu.memory_space<vmem>>, vector<1x512xf32>
    tpu.vector_store %arg2[%c0_1, %c0_2], %0 {strides = array<i32>} : memref<1x512xf32, #tpu.memory_space<vmem>>, vector<1x512xf32>,
    return
  }
  func.func @transform_0(%arg0: i32) -> (i32, i32) {
    %c0_i32 = arith.constant 0 : i32
    %c0_i32_0 = arith.constant 0 : i32
    return %arg0, %c0_i32 : i32, i32
  }
  func.func @transform_1(%arg0: i32) -> (i32, i32) {
    %c0_i32 = arith.constant 0 : i32
    %c0_i32_0 = arith.constant 0 : i32
    return %arg0, %c0_i32 : i32, i32
  }
}

</mosaic_0001>

<bundles_post_ra>
// kernel: tpu_custom_call.1
= control target key start
LH: loop header
LB: loop body
LE: loop exit
PB: predicated region body
PF: predicated region fallthrough
CT: control target
= control target key end

     0   :  { %6 = vsyncpa [#allocation3], 0  ;;  %s128_s0 = inlined_call_operand.hbm [shape: f32[1,512], index: 0, kind: input, shape index: {}, may-alias: {0,1}]   ;;  %s129_s1 = inlined_call_operand.hbm [shape: f32[1,512], index: 1, kind: output, shape index: {}, may-alias: {0,1}]  }
   0x1   :  { %7 = vsyncpa [#allocation4], 0  ;;  %s92_s6 = smov [#allocation2]   ;;  %s44_s10 = scalar_lea.hbm %s128_s0, 64 }
   0x2   :  { %s14_s7 = sshll.u32 %s92_s6, 4  ;;  %p45_p0 = scmp.ne.s32.totalorder %s128_s0, %s44_s10  ;;  %s15_s7 = int_to_ptr.vmem [resolvable:$true] %s14_s7 }
   0x3   :  { %p48_p1 = scmp.lt.u32.totalorder %s44_s10, %s128_s0 }
   0x5   :  { %p50_p2 = pnand %p48_p1, %p45_p0 }
   0x7   :  { %53 = shalt.err (!%p50_p2)
}
   0x8   :  { %s54_s15 = scalar_lea.vmem %s15_s7, 64  ;;  %p59_p4 = scmp.lt.s32.totalorder %s15_s7, %s15_s7 }
   0x9   :  { %p55_p3 = scmp.ne.s32.totalorder %s15_s7, %s54_s15  ;;  %p60_p5 = scmp.lt.s32.totalorder %s54_s15, %s54_s15 }
   0xb   :  { %p61_p6 = por %p60_p5, %p59_p4 }
   0xd   :  { %p62_p7 = pnand %p61_p6, %p55_p3 }
   0xf   :  { %65 = shalt.err (!%p62_p7)
}
  0x10   :  { %17 = dma.hbm_to_vmem [thread:$0]  %s128_s0, 64, %s15_s7, [#allocation3]  }
  0x11   :  { %88 = dma.done.wait [#allocation3], 64  }
  0x12   :  { %89 = vsyncadd [#allocation3], 4294967232  ;;  %v22_v0 = vlaneseq  ;;  %s93_s18 = smov [#allocation5]   ;;  %v21_v1 = vld [vmem:[#allocation2] sm:$0xf] }
  0x13   :  { %s33_s19 = sshll.u32 %s93_s18, 4  ;;  %s34_s19 = int_to_ptr.vmem [resolvable:$true] %s33_s19 }
  0x14   :  { %vm24_vm0 = vcmp.lt.s32.totalorder %v22_v0, 512  ;;  %s66_s20 = scalar_lea.vmem %s34_s19, 64  ;;  %p71_p9 = scmp.lt.s32.totalorder %s34_s19, %s34_s19 }
  0x15   :  { %26 = vst.msk [vmem:[#allocation5] sm:$0xf] %vm24_vm0, %v21_v1  ;;  %p67_p8 = scmp.ne.s32.totalorder %s34_s19, %s66_s20  ;;  %p72_p10 = scmp.lt.s32.totalorder %s66_s20, %s66_s20 }
  0x17   :  { %p73_p11 = por %p72_p10, %p71_p9 }
  0x19   :  { %p74_p12 = pnand %p73_p11, %p67_p8 }
  0x1b   :  { %77 = shalt.err (!%p74_p12)
}
  0x1c   :  { %s78_s0 = scalar_lea.hbm %s129_s1, 64 }
  0x1d   :  { %p79_p13 = scmp.ne.s32.totalorder %s129_s1, %s78_s0  ;;  %p82_p0 = scmp.lt.u32.totalorder %s78_s0, %s129_s1 }
  0x1f   :  { %p84_p1 = pnand %p82_p0, %p79_p13 }
  0x21   :  { %87 = shalt.err (!%p84_p1)
}
  0x22   :  { %36 = dma.vmem_to_hbm [thread:$0]  %s34_s19, 64, %s129_s1, [#allocation4]  }
  0x23   :  { %90 = dma.done.wait [#allocation4], 64  }
  0x24   :  { %91 = vsyncadd [#allocation4], 4294967232 }
  0x25   :  { %40 = vsyncpa [#allocation3], 1 }
  0x26   :  { %41 = vsyncpa [#allocation4], 1 }

</bundles_post_ra>
